<compile_context>
chip_gen: v7x
topology: tpu7x:2x2x1
jax: 0.10.0
libtpu: 0.0.40
codegen_flags: <defaults>
</compile_context>

<pallas_src>
import functools

import jax
import jax.numpy as jnp
from jax.experimental import pallas as pl
from jax.experimental.pallas import tpu as pltpu


# ----------------------------- kernels ---------------------------------------

def _linear_kernel(x_ref, w_ref, b_ref, o_ref):
    # Eval mode: dropout is the identity, the hot path is just the Linear.
    x = x_ref[...]                      # [B, in]
    w = w_ref[...]                      # [padN, in]  (nn.Linear layout, padded)
    b = b_ref[...]                      # [1, padN]
    y = jax.lax.dot_general(
        x, w,
        dimension_numbers=(((1,), (1,)), ((), ())),   # contract feature axes
        preferred_element_type=jnp.float32)
    o_ref[...] = (y + b.astype(jnp.float32)).astype(o_ref.dtype)


def _dropout_linear_kernel(x_ref, bits_ref, w_ref, b_ref, o_ref, *,
                           keep_threshold, scale):
    # Training mode: dropout mask via integer threshold on raw uint32 bits.
    #   P(bits < thresh) = p  -> drop;  P(bits >= thresh) = 1-p -> keep*1/(1-p)
    # Folded into one select + one multiply (2 VPU ops per vreg).
    x = x_ref[...]                      # [B, in]
    bits = bits_ref[...]                # [B, in] uint32
    keep = bits >= jnp.uint32(keep_threshold)
    mask = jnp.where(keep,
                     jnp.asarray(scale, dtype=x.dtype),
                     jnp.asarray(0.0, dtype=x.dtype))
    x = x * mask                        # stays in the model dtype (no f32 upcast)
    w = w_ref[...]                      # [padN, in]
    b = b_ref[...]                      # [1, padN]
    y = jax.lax.dot_general(
        x, w,
        dimension_numbers=(((1,), (1,)), ((), ())),
        preferred_element_type=jnp.float32)
    o_ref[...] = (y + b.astype(jnp.float32)).astype(o_ref.dtype)


# ----------------------------- wrapper ----------------------------------------

def cls_classifier(cls_out, weight, bias, *, dropout_prob=0.5,
                   training=False, rng_key=None):
    """Pallas implementation of CLSClassifier.forward.

    cls_out: [batch, in_size]
    weight : [out_size, in_size]   (PyTorch nn.Linear layout, NOT transposed)
    bias   : [out_size]
    returns: [batch, out_size]
    """
    batch, in_size = cls_out.shape
    out_size, w_in = weight.shape
    assert w_in == in_size, "weight in_features mismatch"

    # p == 1 zeroes the entire input; Linear of zeros is just the bias.
    if training and dropout_prob >= 1.0:
        return jnp.broadcast_to(bias.astype(cls_out.dtype), (batch, out_size))

    # Lane-dense output: pad the out dimension up to a multiple of 128.
    # (In a real model, pad W/b once at init instead of per call.)
    pad_n = ((out_size + 127) // 128) * 128
    w_pad = jnp.pad(weight, ((0, pad_n - out_size), (0, 0)))   # [padN, in]
    b_pad = jnp.pad(bias, (0, pad_n - out_size)).reshape(1, pad_n)

    out_shape = jax.ShapeDtypeStruct((batch, pad_n), cls_out.dtype)
    vmem = pl.BlockSpec(memory_space=pltpu.MemorySpace.VMEM)

    # NOTE: at this (tiny) size a single grid point with full-array blocks is
    # the right choice.  At BERT scale (in_size=768/1024, large batch / vocab
    # out_size) replace full blocks with a (batch, out) parallel grid, K-axis
    # "arbitrary" + f32 VMEM accumulator, bf16 MXU inputs, and tiles sized for
    # v7x's 64 MiB VMEM (half of v5e/v6e).

    if (not training) or dropout_prob == 0.0:
        y = pl.pallas_call(
            _linear_kernel,
            out_shape=out_shape,
            in_specs=[vmem, vmem, vmem],
            out_specs=vmem,
        )(cls_out, w_pad, b_pad)
        return y[:, :out_size]

    if rng_key is None:
        rng_key = jax.random.PRNGKey(0)
    bits = jax.random.bits(rng_key, (batch, in_size), dtype=jnp.uint32)
    keep_threshold = min(int(round(float(dropout_prob) * (1 << 32))),
                         (1 << 32) - 1)
    scale = 1.0 / (1.0 - float(dropout_prob))
    kernel = functools.partial(_dropout_linear_kernel,
                               keep_threshold=keep_threshold, scale=scale)
    y = pl.pallas_call(
        kernel,
        out_shape=out_shape,
        in_specs=[vmem, vmem, vmem, vmem],
        out_specs=vmem,
    )(cls_out, bits, w_pad, b_pad)
    return y[:, :out_size]


# ----------------------------- demo / test ------------------------------------

if __name__ == "__main__":
    key = jax.random.PRNGKey(0)
    k_x, k_w, k_b = jax.random.split(key, 3)

    batch, in_size, out_size = 8, 32, 3

    # Deterministic parameter init mimicking nn.Linear default
    # (uniform(-1/sqrt(in_size), 1/sqrt(in_size))).
    bound = 1.0 / (in_size ** 0.5)
    weight = jax.random.uniform(k_w, (out_size, in_size), jnp.float32,
                                minval=-bound, maxval=bound)
    bias = jax.random.uniform(k_b, (out_size,), jnp.float32,
                              minval=-bound, maxval=bound)
    cls_out = jax.random.normal(k_x, (batch, in_size), jnp.float32)

    # ---- eval mode (dropout = identity) ----
    y = cls_classifier(cls_out, weight, bias, dropout_prob=0.5, training=False)
    y = jax.block_until_ready(y)
    y_ref = cls_out @ weight.T + bias
    assert y.shape == (batch, out_size)
    assert jnp.allclose(y, y_ref, atol=1e-5, rtol=1e-5), "eval mismatch"

    # ---- training mode (integer-threshold dropout) ----
    p = 0.5
    drop_key = jax.random.PRNGKey(123)
    y_tr = cls_classifier(cls_out, weight, bias, dropout_prob=p,
                          training=True, rng_key=drop_key)
    y_tr = jax.block_until_ready(y_tr)
    # Reference uses the exact same bits the wrapper derives from drop_key.
    bits = jax.random.bits(drop_key, (batch, in_size), dtype=jnp.uint32)
    thresh = jnp.uint32(min(int(round(p * (1 << 32))), (1 << 32) - 1))
    mask = (bits >= thresh).astype(jnp.float32) * (1.0 / (1.0 - p))
    y_tr_ref = (cls_out * mask) @ weight.T + bias
    assert y_tr.shape == (batch, out_size)
    assert jnp.allclose(y_tr, y_tr_ref, atol=1e-5, rtol=1e-5), "train mismatch"

    print("KERNEL_OK")
</pallas_src>

<mosaic_0001>
module attributes {stable_mosaic.version = 11 : i64} {
  func.func @_linear_kernel(%arg0: memref<8x32xf32, #tpu.memory_space<vmem>>, %arg1: memref<128x32xf32, #tpu.memory_space<vmem>>, %arg2: memref<1x128xf32, #tpu.memory_space<vmem>>, %arg3: memref<8x128xf32, #tpu.memory_space<vmem>>) attributes {dimension_semantics = [], scalar_prefetch = 0 : i64, scratch_operands = 0 : i64, tpu.core_type = #tpu.core_type<tc>} {
    %c0 = arith.constant 0 : index
    %c0_0 = arith.constant 0 : index
    %0 = vector.load %arg0[%c0, %c0_0] : memref<8x32xf32, #tpu.memory_space<vmem>>, vector<8x32xf32>
    %c0_1 = arith.constant 0 : index
    %c0_2 = arith.constant 0 : index
    %1 = vector.load %arg1[%c0_1, %c0_2] : memref<128x32xf32, #tpu.memory_space<vmem>>, vector<128x32xf32>
    %c0_3 = arith.constant 0 : index
    %c0_4 = arith.constant 0 : index
    %2 = vector.load %arg2[%c0_3, %c0_4] : memref<1x128xf32, #tpu.memory_space<vmem>>, vector<1x128xf32>
    %cst = arith.constant dense<0.000000e+00> : vector<8x128xf32>
    %3 = tpu.matmul %0, %1, %cst {dimension_numbers = #tpu.dot_dimension_numbers<[1], [1], [0], [0], [0, 0, 1, 0], [], []>} : vector<8x32xf32>, vector<128x32xf32>, vector<8x128xf32> -> vector<8x128xf32>
    %4 = vector.broadcast %2 : vector<1x128xf32> to vector<8x128xf32>
    %5 = arith.addf %3, %4 : vector<8x128xf32>
    %c0_5 = arith.constant 0 : index
    %c0_6 = arith.constant 0 : index
    %6 = vector.load %arg3[%c0_5, %c0_6] : memref<8x128xf32, #tpu.memory_space<vmem>>, vector<8x128xf32>
    tpu.vector_store %arg3[%c0_5, %c0_6], %5 {strides = array<i32>} : memref<8x128xf32, #tpu.memory_space<vmem>>, vector<8x128xf32>,
    return
  }
}

</mosaic_0001>

<bundles_post_ra>
// kernel: tpu_custom_call.1
= control target key start
LH: loop header
LB: loop body
LE: loop exit
PB: predicated region body
PF: predicated region fallthrough
CT: control target
= control target key end

     0   :  { %vm39_vm0 = vcmask 261120   ;;  %v306_v2 = vmov 0.0|0.0   ;;  %vm307_vm2 = vmmov 0   ;;  %v308_v5 = vmov 0.0   ;;  %s419_s0 = inlined_call_operand.vmem [shape: f32[8,32], index: 0, kind: input, shape index: {}]   ;;  %s420_s1 = inlined_call_operand.vmem [shape: f32[128,32], index: 1, kind: input, shape index: {}]   ;;  %s421_s2 = inlined_call_operand.vmem [shape: f32[1,128], index: 2, kind: input, shape index: {}]   ;;  %s422_s3 = inlined_call_operand.hbm [shape: f32[8,128], index: 3, kind: output, shape index: {}]  }
   0x1   :  { %v16_v0 = vld [vmem:[%s420_s1] sm:$0xff]  ;;  %v17_v1 = vld [vmem:[%s420_s1 + $0x8] sm:$0xff]  ;;  %246 = vmatprep.subr.bf16.mxu0 %v306_v2  ;;  %vm338_vm1 = vmpackc.low %vm39_vm0, %vm39_vm0  ;;  %243 = vmatprep.mubr.msk.f32.mxu0 %vm307_vm2, %v308_v5 }
   0x2   :  { %v247_v3 = vpack.c.bf16 %v17_v1, %v16_v0  ;;  %v18_v6 = vld [vmem:[%s420_s1 + $0x10] sm:$0xff]  ;;  %v19_v7 = vld [vmem:[%s420_s1 + $0x18] sm:$0xff] }
   0x4   :  { %249 = vmatpush3.bf16.xpose.msk.msra.mxu0 %vm338_vm1, %v247_v3 }
   0x5   :  { %250 = vmatprep.subr.bf16.mxu0 %v306_v2 }
   0x6   :  { %8 = vsyncpa [#allocation3], 0  ;;  %v251_v8 = vpack.c.bf16 %v19_v7, %v18_v6  ;;  %v20_v9 = vld [vmem:[%s420_s1 + $0x20] sm:$0xff]  ;;  %v21_v10 = vld [vmem:[%s420_s1 + $0x28] sm:$0xff]  ;;  %s309_s21 = smov [#allocation2]  }
   0x7   :  { %v255_v11 = vpack.c.bf16 %v21_v10, %v20_v9  ;;  %v22_v12 = vld [vmem:[%s420_s1 + $0x30] sm:$0xff]  ;;  %v23_v13 = vld [vmem:[%s420_s1 + $0x38] sm:$0xff]  ;;  %v24_v15 = vld [vmem:[%s420_s1 + $0x40] sm:$0xff]  ;;  %s168_s22 = sshll.u32 %s309_s21, 4  ;;  %s169_s22 = int_to_ptr.vmem [resolvable:$true] %s168_s22 }
   0x8   :  { %v259_v14 = vpack.c.bf16 %v23_v13, %v22_v12  ;;  %v25_v16 = vld [vmem:[%s420_s1 + $0x48] sm:$0xff]  ;;  %v26_v18 = vld [vmem:[%s420_s1 + $0x50] sm:$0xff]  ;;  %v27_v19 = vld [vmem:[%s420_s1 + $0x58] sm:$0xff]  ;;  %p287_p1 = scmp.lt.s32.totalorder %s169_s22, %s169_s22 }
   0x9   :  { %v263_v17 = vpack.c.bf16 %v25_v16, %v24_v15  ;;  %v267_v20 = vpack.c.bf16 %v27_v19, %v26_v18  ;;  %v28_v21 = vld [vmem:[%s420_s1 + $0x60] sm:$0xff]  ;;  %v29_v22 = vld [vmem:[%s420_s1 + $0x68] sm:$0xff]  ;;  %v30_v24 = vld [vmem:[%s420_s1 + $0x70] sm:$0xff] }
   0xa   :  { %v271_v23 = vpack.c.bf16 %v29_v22, %v28_v21  ;;  %v31_v25 = vld [vmem:[%s420_s1 + $0x78] sm:$0xff]  ;;  %v15_v27 = vld [vmem:[%s419_s0] sm:$0xff]  ;;  %s282_s1 = scalar_lea.vmem %s169_s22, 128 }
   0xb   :  { %v275_v26 = vpack.c.bf16 %v31_v25, %v30_v24  ;;  %v176_v28 = vld [vmem:[%s421_s2] ss:$0 sm:$0xff]  ;;  %p283_p0 = scmp.ne.s32.totalorder %s169_s22, %s282_s1  ;;  %p288_p2 = scmp.lt.s32.totalorder %s282_s1, %s282_s1 }
   0xc   :  { %253 = vmatpush3.bf16.xpose.msk.msra.mxu0 %vm338_vm1, %v251_v8 }
   0xd   :  { %254 = vmatprep.subr.bf16.mxu0 %v306_v2  ;;  %p289_p3 = por %p288_p2, %p287_p1 }
   0xf   :  { %p290_p4 = pnand %p289_p3, %p283_p0 }
  0x14   :  { %257 = vmatpush3.bf16.xpose.msk.msra.mxu0 %vm338_vm1, %v255_v11 }
  0x15   :  { %258 = vmatprep.subr.bf16.mxu0 %v306_v2 }
  0x1c   :  { %261 = vmatpush3.bf16.xpose.msk.msra.mxu0 %vm338_vm1, %v259_v14 }
  0x1d   :  { %262 = vmatprep.subr.bf16.mxu0 %v306_v2 }
  0x24   :  { %265 = vmatpush3.bf16.xpose.msk.msra.mxu0 %vm338_vm1, %v263_v17 }
  0x25   :  { %266 = vmatprep.subr.bf16.mxu0 %v306_v2 }
  0x2c   :  { %269 = vmatpush3.bf16.xpose.msk.msra.mxu0 %vm338_vm1, %v267_v20 }
  0x2d   :  { %270 = vmatprep.subr.bf16.mxu0 %v306_v2 }
  0x34   :  { %273 = vmatpush3.bf16.xpose.msk.msra.mxu0 %vm338_vm1, %v271_v23 }
  0x35   :  { %274 = vmatprep.subr.bf16.mxu0 %v306_v2 }
  0x3c   :  { %277 = vmatpush3.bf16.xpose.msk.msra.mxu0 %vm338_vm1, %v275_v26 }
  0x43   :  { %244 = vmatmul.mubr.msk.f32.vlgmr.msra.gmra.mrb[0].mxu0 %vm39_vm0, %v15_v27 }
 0x116   :  { %v157_v29 = vpop.f32.mrb[0].mxu0 }
 0x117   :  { %v158_v30 = vadd.f32 %v176_v28, %v157_v29  ;;  %v245_v31 = vpop.f32.mrb[1].mxu0 }
 0x119   :  { %161 = vst [vmem:[#allocation2] sm:$0xff] %v158_v30 }
 0x11a   :  { %293 = shalt.err (!%p290_p4)
}
 0x11b   :  { %s294_s24 = scalar_lea.hbm %s422_s3, 128 }
 0x11c   :  { %p295_p5 = scmp.ne.s32.totalorder %s422_s3, %s294_s24  ;;  %p298_p6 = scmp.lt.u32.totalorder %s294_s24, %s422_s3 }
 0x11e   :  { %p300_p7 = pnand %p298_p6, %p295_p5 }
 0x120   :  { %303 = shalt.err (!%p300_p7)
}
 0x121   :  { %171 = dma.vmem_to_hbm [thread:$0]  %s169_s22, 128, %s422_s3, [#allocation3]  }
 0x122   :  { %304 = dma.done.wait [#allocation3], 128  }
 0x123   :  { %305 = vsyncadd [#allocation3], 4294967168 }
 0x124   :  { %175 = vsyncpa [#allocation3], 1 }

</bundles_post_ra>
